<compile_context>
chip_gen: v6e
topology: v6e:2x2x1
jax: 0.10.0
libtpu: 0.0.40
codegen_flags: <defaults>
</compile_context>

<pallas_src>
import functools

import jax
import jax.numpy as jnp
from jax import lax
from jax.experimental import pallas as pl
from jax.experimental.pallas import tpu as pltpu


# ----------------------------- Pallas kernel ------------------------------ #
def _conv_bn_relu_kernel(edge_ref, x_ref, w_ref, scale_ref, bias_ref, o_ref,
                         xpad_ref, im_ref, *, H, W, bn):
    """Fused 3x3 conv (stride 1, pad 1) + eval BN + ReLU for bn images.

    edge_ref : [2, H*W]            i32  resident: row0 = (w != 0), row1 = (w != W-1)
    x_ref    : [bn, C, H*W]        f32  raw flattened activations (no HBM pad/cast)
    w_ref    : [Cout, 9*C]         bf16 raw conv weights, column = (dy*3+dx)*C + c
    scale_ref: [Cout, 1]           f32  gamma / sqrt(var + eps)
    bias_ref : [Cout, 1]           f32  beta + (conv_bias - mean) * scale
    o_ref    : [bn, Cout, H*W]     bf16 lane-dense, NCHW-compatible output slab
    xpad_ref : [C, P0 + H*W + W+1] f32  scratch: flattened, zero-padded image
    im_ref   : [9*C, H*W]          bf16 scratch: stacked im2col block (K = 9*C)
    """
    HW = H * W
    C = x_ref.shape[1]
    Lpad = xpad_ref.shape[1]
    P0 = Lpad - (HW + W + 1)        # lane-aligned image start (multiple of 128)
    base = P0 - (W + 1)             # tap base offset: tap (dy,dx) starts at base+dy*W+dx

    # Zero the padded-image scratch once; per step only the aligned middle
    # [P0, P0+HW) is rewritten, so the zero borders persist across grid steps.
    @pl.when(pl.program_id(0) == 0)
    def _():
        xpad_ref[...] = jnp.zeros_like(xpad_ref)

    # Horizontal-edge validity masks: precomputed in the wrapper, two cheap
    # integer compares per grid step (no iota / modulo in the hot body).
    mask_l = edge_ref[0:1, :] != 0          # invalid source column for dx == 0
    mask_r = edge_ref[1:2, :] != 0          # invalid source column for dx == 2

    for b in range(bn):
        # In-kernel pad: lane-aligned store of the raw f32 image into the
        # zero-padded scratch (offset P0 is a multiple of 128 -> dense vst).
        xpad_ref[:, P0:P0 + HW] = x_ref[b].astype(xpad_ref.dtype)

        # Build the stacked im2col block: every 3x3 tap is a static lane-offset
        # slice of the padded image.  Vertical out-of-image reads land in the
        # zero borders by construction; only the left/right column edges need a
        # select (applied on f32 — no bf16 VALU work).
        for dy in range(3):
            for dx in range(3):
                t = dy * 3 + dx
                s = base + dy * W + dx
                tap = xpad_ref[:, s:s + HW]                   # [C, HW] f32
                if dx == 0:
                    tap = jnp.where(mask_l, tap, 0.0)
                elif dx == 2:
                    tap = jnp.where(mask_r, tap, 0.0)
                im_ref[t * C:(t + 1) * C, :] = tap.astype(im_ref.dtype)

        # Single MXU matmul with K = 9*C (replaces 9 tiny K=C dots + VPU adds).
        acc = jnp.dot(w_ref[...], im_ref[...],
                      preferred_element_type=jnp.float32)     # [Cout, HW] f32

        # Eval-mode BN + conv bias + ReLU, all in f32 epilogue.
        y = acc * scale_ref[...] + bias_ref[...]
        o_ref[b] = jnp.maximum(y, 0.0).astype(o_ref.dtype)


def _fused_conv_bn_relu(x_flat, w_mat, scale, bias, edge_mask, *, H, W, bn,
                        out_dtype=jnp.bfloat16):
    """x_flat: [N, C, H*W] f32, w_mat: [Cout, 9*C] bf16, scale/bias: [Cout, 1] f32."""
    N, C, HW = x_flat.shape
    Cout = w_mat.shape[0]
    assert N % bn == 0
    # Lane-aligned image start inside the padded scratch.
    P0 = -(-(W + 1) // 128) * 128
    Lpad = P0 + HW + W + 1

    kernel = functools.partial(_conv_bn_relu_kernel, H=H, W=W, bn=bn)
    return pl.pallas_call(
        kernel,
        out_shape=jax.ShapeDtypeStruct((N, Cout, HW), out_dtype),
        grid_spec=pltpu.PrefetchScalarGridSpec(
            num_scalar_prefetch=0,
            grid=(N // bn,),
            in_specs=[
                pl.BlockSpec((2, HW), lambda n: (0, 0)),         # edge masks (resident)
                pl.BlockSpec((bn, C, HW), lambda n: (n, 0, 0)),  # raw f32 activations
                pl.BlockSpec((Cout, 9 * C), lambda n: (0, 0)),   # bf16 weights, one tile
                pl.BlockSpec((Cout, 1), lambda n: (0, 0)),       # BN scale (f32)
                pl.BlockSpec((Cout, 1), lambda n: (0, 0)),       # folded bias (f32)
            ],
            out_specs=pl.BlockSpec((bn, Cout, HW), lambda n: (n, 0, 0)),
            scratch_shapes=[
                pltpu.VMEM((C, Lpad), jnp.float32),              # padded image
                pltpu.VMEM((9 * C, HW), jnp.bfloat16),           # stacked im2col
            ],
        ),
        compiler_params=pltpu.CompilerParams(
            dimension_semantics=("parallel",),   # shards batch groups across v7x's 2 TCs
            vmem_limit_bytes=32 << 20,
        ),
    )(edge_mask, x_flat, w_mat, scale, bias)


# ------------------------------- wrapper ---------------------------------- #
class ConvBNReLU:
    """Synthetic wrapped module: Conv2d(4,8,3,p=1,bias) + BatchNorm2d(8, eval) + ReLU."""

    def __init__(self, key, c_in=4, c_out=8, eps=1e-5, out_dtype=jnp.bfloat16):
        k_w, k_b, k_g, k_bt, k_m, k_v = jax.random.split(key, 6)
        self.c_in, self.c_out, self.eps = c_in, c_out, eps
        self.out_dtype = out_dtype   # bf16: downstream SiamRPN layers consume bf16
        self.weight = 0.1 * jax.random.normal(k_w, (c_out, c_in, 3, 3), jnp.float32)
        self.conv_bias = 0.1 * jax.random.normal(k_b, (c_out,), jnp.float32)
        self.gamma = 1.0 + 0.1 * jax.random.normal(k_g, (c_out,), jnp.float32)
        self.beta = 0.1 * jax.random.normal(k_bt, (c_out,), jnp.float32)
        self.running_mean = 0.1 * jax.random.normal(k_m, (c_out,), jnp.float32)
        self.running_var = jnp.abs(1.0 + 0.1 * jax.random.normal(k_v, (c_out,), jnp.float32))

    def __call__(self, x_nchw):
        N, C, H, W = x_nchw.shape
        HW = H * W
        # TODO(synk): real SiamRPN maps (25x25, 31x31) need the spatial axis
        # padded/tiled to 128-lane multiples with row-block tiles sized for
        # v7x's 64 MiB VMEM; the toy 16x16 = 256 is already lane-dense.
        assert HW % 128 == 0, "toy path assumes lane-dense H*W"

        x_flat = x_nchw.reshape(N, C, HW)          # free reshape, no pad/cast in HBM

        # Raw conv weights as a single [Cout, 9*C] bf16 matrix, column index
        # = (dy*3+dx)*C + c, matching the im2col row layout in the kernel.
        w_mat = jnp.transpose(self.weight, (0, 2, 3, 1)).reshape(self.c_out, 9 * self.c_in)
        w_mat = w_mat.astype(jnp.bfloat16)

        # Eval-mode BN kept as an f32 epilogue (not folded into bf16 weights so
        # a tiny running_var cannot inflate weight quantization error).
        scale = self.gamma / jnp.sqrt(self.running_var + self.eps)           # [Cout]
        bias = self.beta + (self.conv_bias - self.running_mean) * scale      # [Cout]

        # Horizontal-edge validity masks, computed once (no per-step modulo).
        ww = jnp.arange(HW, dtype=jnp.int32) % W
        edge_mask = jnp.stack([ww != 0, ww != W - 1]).astype(jnp.int32)      # [2, HW]

        # Pack several images per grid step so each step amortizes the ~0.35us
        # fixed cost; at real feature-map sizes bn falls back towards 1 and a
        # spatial row-block grid axis should be added instead.
        bn = max(1, min(N, 2048 // HW))
        while N % bn:
            bn -= 1

        out = _fused_conv_bn_relu(x_flat, w_mat,
                                  scale.reshape(self.c_out, 1),
                                  bias.reshape(self.c_out, 1),
                                  edge_mask, H=H, W=W, bn=bn,
                                  out_dtype=self.out_dtype)
        return out.reshape(N, self.c_out, H, W)    # already NCHW; no transpose


class DistModule:
    """JAX/Pallas port of pysot DistModule (single-device path)."""

    def __init__(self, module, bn_method=0, world_size=1):
        self.module = module
        self.world_size = world_size
        if world_size > 1:
            # TODO(synk): broadcast_params via dist.broadcast would map to
            # pltpu.make_async_remote_copy + barrier semaphores; single device here.
            self.bn_method = bn_method
        else:
            self.bn_method = 0  # matches PyTorch: world_size == 1 -> bn_method = 0

    def _broadcast_buffers(self):
        if self.bn_method == 0:
            return  # no-op, exactly as in the reference
        # TODO(synk): bn_method 1/2 (dist.broadcast / all_reduce of BN buffers)
        # needs multi-device remote DMA; not applicable with world_size == 1.

    def forward(self, *args, **kwargs):
        self._broadcast_buffers()
        return self.module(*args, **kwargs)

    __call__ = forward


# ------------------------------- reference -------------------------------- #
def _reference(module, x_nchw):
    out = lax.conv_general_dilated(
        x_nchw, module.weight, window_strides=(1, 1), padding=((1, 1), (1, 1)),
        dimension_numbers=("NCHW", "OIHW", "NCHW"))
    out = out + module.conv_bias[None, :, None, None]
    scale = module.gamma / jnp.sqrt(module.running_var + module.eps)
    out = (out - module.running_mean[None, :, None, None]) * scale[None, :, None, None]
    out = out + module.beta[None, :, None, None]
    return jnp.maximum(out, 0.0)


if __name__ == "__main__":
    key = jax.random.PRNGKey(0)
    k_mod, k_x = jax.random.split(key)

    inner = ConvBNReLU(k_mod, c_in=4, c_out=8)
    model = DistModule(inner, bn_method=2)  # forced to 0 since world_size == 1

    x = jax.random.normal(k_x, (2, 4, 16, 16), jnp.float32)  # NCHW, like PyTorch

    y = model(x)
    y = jax.block_until_ready(y)

    y_ref = jax.block_until_ready(_reference(inner, x))
    assert y.shape == (2, 8, 16, 16)
    # bf16 MXU operands + bf16 output -> loosen tolerance vs the f32 reference.
    assert jnp.allclose(y.astype(jnp.float32), y_ref, atol=5e-2, rtol=5e-2), \
        "mismatch vs reference"

    print("KERNEL_OK")
</pallas_src>

<mosaic_0001>
module attributes {stable_mosaic.version = 11 : i64} {
  func.func @_conv_bn_relu_kernel(%arg0: i32, %arg1: memref<2x256xi32, #tpu.memory_space<vmem>>, %arg2: memref<2x4x256xf32, #tpu.memory_space<vmem>>, %arg3: memref<8x36xbf16, #tpu.memory_space<vmem>>, %arg4: memref<8x1xf32, #tpu.memory_space<vmem>>, %arg5: memref<8x1xf32, #tpu.memory_space<vmem>>, %arg6: memref<2x8x256xbf16, #tpu.memory_space<vmem>>, %arg7: memref<4x401xf32, #tpu.memory_space<vmem>>, %arg8: memref<36x256xbf16, #tpu.memory_space<vmem>>) attributes {dimension_semantics = [#tpu.dimension_semantics<parallel>], iteration_bounds = array<i64: 1>, scalar_prefetch = 0 : i64, scratch_operands = 2 : i64, tpu.core_type = #tpu.core_type<tc>, window_params = [{pipeline_mode = #tpu.pipeline_mode<synchronous>, transform_indices = @transform_0, window_bounds = array<i64: 2, 256>}, {transform_indices = @transform_1, window_bounds = array<i64: 2, 4, 256>}, {pipeline_mode = #tpu.pipeline_mode<synchronous>, transform_indices = @transform_2, window_bounds = array<i64: 8, 36>}, {pipeline_mode = #tpu.pipeline_mode<synchronous>, transform_indices = @transform_3, window_bounds = array<i64: 8, 1>}, {pipeline_mode = #tpu.pipeline_mode<synchronous>, transform_indices = @transform_4, window_bounds = array<i64: 8, 1>}, {transform_indices = @transform_5, window_bounds = array<i64: 2, 8, 256>}]} {
    %c0_i32 = arith.constant 0 : i32
    %0 = arith.cmpi eq, %arg0, %c0_i32 : i32
    %1 = arith.extui %0 : i1 to i32
    %c0_i32_0 = arith.constant 0 : i32
    %2 = arith.cmpi ne, %1, %c0_i32_0 : i32
    scf.if %2 {
      %cst_107 = arith.constant 0.000000e+00 : f32
      %147 = vector.broadcast %cst_107 : f32 to vector<4x401xf32>
      %c0_108 = arith.constant 0 : index
      %c0_109 = arith.constant 0 : index
      %148 = vector.load %arg7[%c0_108, %c0_109] : memref<4x401xf32, #tpu.memory_space<vmem>>, vector<4x401xf32>
      tpu.vector_store %arg7[%c0_108, %c0_109], %147 {strides = array<i32>} : memref<4x401xf32, #tpu.memory_space<vmem>>, vector<4x401xf32>,
    } else {
    }
    %c0 = arith.constant 0 : index
    %c0_1 = arith.constant 0 : index
    %3 = vector.load %arg1[%c0, %c0_1] : memref<2x256xi32, #tpu.memory_space<vmem>>, vector<1x256xi32>
    %c0_i32_2 = arith.constant 0 : i32
    %4 = vector.broadcast %c0_i32_2 : i32 to vector<1x256xi32>
    %5 = arith.cmpi ne, %3, %4 : vector<1x256xi32>
    %c1 = arith.constant 1 : index
    %c0_3 = arith.constant 0 : index
    %6 = vector.load %arg1[%c1, %c0_3] : memref<2x256xi32, #tpu.memory_space<vmem>>, vector<1x256xi32>
    %c0_i32_4 = arith.constant 0 : i32
    %7 = vector.broadcast %c0_i32_4 : i32 to vector<1x256xi32>
    %8 = arith.cmpi ne, %6, %7 : vector<1x256xi32>
    %c0_5 = arith.constant 0 : index
    %c0_6 = arith.constant 0 : index
    %c0_7 = arith.constant 0 : index
    %9 = vector.load %arg2[%c0_5, %c0_6, %c0_7] : memref<2x4x256xf32, #tpu.memory_space<vmem>>, vector<1x4x256xf32>
    %10 = vector.shape_cast %9 : vector<1x4x256xf32> to vector<4x256xf32>
    %c0_8 = arith.constant 0 : index
    %c128 = arith.constant 128 : index
    %11 = vector.load %arg7[%c0_8, %c128] : memref<4x401xf32, #tpu.memory_space<vmem>>, vector<4x256xf32>
    tpu.vector_store %arg7[%c0_8, %c128], %10 {strides = array<i32>} : memref<4x401xf32, #tpu.memory_space<vmem>>, vector<4x256xf32>,
    %c0_9 = arith.constant 0 : index
    %c111 = arith.constant 111 : index
    %12 = vector.load %arg7[%c0_9, %c111] : memref<4x401xf32, #tpu.memory_space<vmem>>, vector<4x256xf32>
    %cst = arith.constant 0.000000e+00 : f32
    %13 = vector.shape_cast %5 : vector<1x256xi1> to vector<1x256xi1>
    %14 = vector.broadcast %13 : vector<1x256xi1> to vector<4x256xi1>
    %15 = vector.broadcast %cst : f32 to vector<4x256xf32>
    %16 = arith.select %14, %12, %15 : vector<4x256xi1>, vector<4x256xf32>
    %17 = arith.truncf %16 : vector<4x256xf32> to vector<4x256xbf16>
    %c0_10 = arith.constant 0 : index
    %c0_11 = arith.constant 0 : index
    %18 = vector.load %arg8[%c0_10, %c0_11] : memref<36x256xbf16, #tpu.memory_space<vmem>>, vector<4x256xbf16>
    tpu.vector_store %arg8[%c0_10, %c0_11], %17 {strides = array<i32>} : memref<36x256xbf16, #tpu.memory_space<vmem>>, vector<4x256xbf16>,
    %c0_12 = arith.constant 0 : index
    %c112 = arith.constant 112 : index
    %19 = vector.load %arg7[%c0_12, %c112] : memref<4x401xf32, #tpu.memory_space<vmem>>, vector<4x256xf32>
    %20 = arith.truncf %19 : vector<4x256xf32> to vector<4x256xbf16>
    %c4 = arith.constant 4 : index
    %c0_13 = arith.constant 0 : index
    %21 = vector.load %arg8[%c4, %c0_13] : memref<36x256xbf16, #tpu.memory_space<vmem>>, vector<4x256xbf16>
    tpu.vector_store %arg8[%c4, %c0_13], %20 {strides = array<i32>} : memref<36x256xbf16, #tpu.memory_space<vmem>>, vector<4x256xbf16>,
    %c0_14 = arith.constant 0 : index
    %c113 = arith.constant 113 : index
    %22 = vector.load %arg7[%c0_14, %c113] : memref<4x401xf32, #tpu.memory_space<vmem>>, vector<4x256xf32>
    %cst_15 = arith.constant 0.000000e+00 : f32
    %23 = vector.shape_cast %8 : vector<1x256xi1> to vector<1x256xi1>
    %24 = vector.broadcast %23 : vector<1x256xi1> to vector<4x256xi1>
    %25 = vector.broadcast %cst_15 : f32 to vector<4x256xf32>
    %26 = arith.select %24, %22, %25 : vector<4x256xi1>, vector<4x256xf32>
    %27 = arith.truncf %26 : vector<4x256xf32> to vector<4x256xbf16>
    %c8 = arith.constant 8 : index
    %c0_16 = arith.constant 0 : index
    %28 = vector.load %arg8[%c8, %c0_16] : memref<36x256xbf16, #tpu.memory_space<vmem>>, vector<4x256xbf16>
    tpu.vector_store %arg8[%c8, %c0_16], %27 {strides = array<i32>} : memref<36x256xbf16, #tpu.memory_space<vmem>>, vector<4x256xbf16>,
    %c0_17 = arith.constant 0 : index
    %c127 = arith.constant 127 : index
    %29 = vector.load %arg7[%c0_17, %c127] : memref<4x401xf32, #tpu.memory_space<vmem>>, vector<4x256xf32>
    %cst_18 = arith.constant 0.000000e+00 : f32
    %30 = vector.shape_cast %5 : vector<1x256xi1> to vector<1x256xi1>
    %31 = vector.broadcast %30 : vector<1x256xi1> to vector<4x256xi1>
    %32 = vector.broadcast %cst_18 : f32 to vector<4x256xf32>
    %33 = arith.select %31, %29, %32 : vector<4x256xi1>, vector<4x256xf32>
    %34 = arith.truncf %33 : vector<4x256xf32> to vector<4x256xbf16>
    %c12 = arith.constant 12 : index
    %c0_19 = arith.constant 0 : index
    %35 = vector.load %arg8[%c12, %c0_19] : memref<36x256xbf16, #tpu.memory_space<vmem>>, vector<4x256xbf16>
    tpu.vector_store %arg8[%c12, %c0_19], %34 {strides = array<i32>} : memref<36x256xbf16, #tpu.memory_space<vmem>>, vector<4x256xbf16>,
    %c0_20 = arith.constant 0 : index
    %c128_21 = arith.constant 128 : index
    %36 = vector.load %arg7[%c0_20, %c128_21] : memref<4x401xf32, #tpu.memory_space<vmem>>, vector<4x256xf32>
    %37 = arith.truncf %36 : vector<4x256xf32> to vector<4x256xbf16>
    %c16 = arith.constant 16 : index
    %c0_22 = arith.constant 0 : index
    %38 = vector.load %arg8[%c16, %c0_22] : memref<36x256xbf16, #tpu.memory_space<vmem>>, vector<4x256xbf16>
    tpu.vector_store %arg8[%c16, %c0_22], %37 {strides = array<i32>} : memref<36x256xbf16, #tpu.memory_space<vmem>>, vector<4x256xbf16>,
    %c0_23 = arith.constant 0 : index
    %c129 = arith.constant 129 : index
    %39 = vector.load %arg7[%c0_23, %c129] : memref<4x401xf32, #tpu.memory_space<vmem>>, vector<4x256xf32>
    %cst_24 = arith.constant 0.000000e+00 : f32
    %40 = vector.shape_cast %8 : vector<1x256xi1> to vector<1x256xi1>
    %41 = vector.broadcast %40 : vector<1x256xi1> to vector<4x256xi1>
    %42 = vector.broadcast %cst_24 : f32 to vector<4x256xf32>
    %43 = arith.select %41, %39, %42 : vector<4x256xi1>, vector<4x256xf32>
    %44 = arith.truncf %43 : vector<4x256xf32> to vector<4x256xbf16>
    %c20 = arith.constant 20 : index
    %c0_25 = arith.constant 0 : index
    %45 = vector.load %arg8[%c20, %c0_25] : memref<36x256xbf16, #tpu.memory_space<vmem>>, vector<4x256xbf16>
    tpu.vector_store %arg8[%c20, %c0_25], %44 {strides = array<i32>} : memref<36x256xbf16, #tpu.memory_space<vmem>>, vector<4x256xbf16>,
    %c0_26 = arith.constant 0 : index
    %c143 = arith.constant 143 : index
    %46 = vector.load %arg7[%c0_26, %c143] : memref<4x401xf32, #tpu.memory_space<vmem>>, vector<4x256xf32>
    %cst_27 = arith.constant 0.000000e+00 : f32
    %47 = vector.shape_cast %5 : vector<1x256xi1> to vector<1x256xi1>
    %48 = vector.broadcast %47 : vector<1x256xi1> to vector<4x256xi1>
    %49 = vector.broadcast %cst_27 : f32 to vector<4x256xf32>
    %50 = arith.select %48, %46, %49 : vector<4x256xi1>, vector<4x256xf32>
    %51 = arith.truncf %50 : vector<4x256xf32> to vector<4x256xbf16>
    %c24 = arith.constant 24 : index
    %c0_28 = arith.constant 0 : index
    %52 = vector.load %arg8[%c24, %c0_28] : memref<36x256xbf16, #tpu.memory_space<vmem>>, vector<4x256xbf16>
    tpu.vector_store %arg8[%c24, %c0_28], %51 {strides = array<i32>} : memref<36x256xbf16, #tpu.memory_space<vmem>>, vector<4x256xbf16>,
    %c0_29 = arith.constant 0 : index
    %c144 = arith.constant 144 : index
    %53 = vector.load %arg7[%c0_29, %c144] : memref<4x401xf32, #tpu.memory_space<vmem>>, vector<4x256xf32>
    %54 = arith.truncf %53 : vector<4x256xf32> to vector<4x256xbf16>
    %c28 = arith.constant 28 : index
    %c0_30 = arith.constant 0 : index
    %55 = vector.load %arg8[%c28, %c0_30] : memref<36x256xbf16, #tpu.memory_space<vmem>>, vector<4x256xbf16>
    tpu.vector_store %arg8[%c28, %c0_30], %54 {strides = array<i32>} : memref<36x256xbf16, #tpu.memory_space<vmem>>, vector<4x256xbf16>,
    %c0_31 = arith.constant 0 : index
    %c145 = arith.constant 145 : index
    %56 = vector.load %arg7[%c0_31, %c145] : memref<4x401xf32, #tpu.memory_space<vmem>>, vector<4x256xf32>
    %cst_32 = arith.constant 0.000000e+00 : f32
    %57 = vector.shape_cast %8 : vector<1x256xi1> to vector<1x256xi1>
    %58 = vector.broadcast %57 : vector<1x256xi1> to vector<4x256xi1>
    %59 = vector.broadcast %cst_32 : f32 to vector<4x256xf32>
    %60 = arith.select %58, %56, %59 : vector<4x256xi1>, vector<4x256xf32>
    %61 = arith.truncf %60 : vector<4x256xf32> to vector<4x256xbf16>
    %c32 = arith.constant 32 : index
    %c0_33 = arith.constant 0 : index
    %62 = vector.load %arg8[%c32, %c0_33] : memref<36x256xbf16, #tpu.memory_space<vmem>>, vector<4x256xbf16>
    tpu.vector_store %arg8[%c32, %c0_33], %61 {strides = array<i32>} : memref<36x256xbf16, #tpu.memory_space<vmem>>, vector<4x256xbf16>,
    %c0_34 = arith.constant 0 : index
    %c0_35 = arith.constant 0 : index
    %63 = vector.load %arg3[%c0_34, %c0_35] : memref<8x36xbf16, #tpu.memory_space<vmem>>, vector<8x36xbf16>
    %c0_36 = arith.constant 0 : index
    %c0_37 = arith.constant 0 : index
    %64 = vector.load %arg8[%c0_36, %c0_37] : memref<36x256xbf16, #tpu.memory_space<vmem>>, vector<36x256xbf16>
    %cst_38 = arith.constant dense<0.000000e+00> : vector<8x256xf32>
    %65 = tpu.matmul %63, %64, %cst_38 {dimension_numbers = #tpu.dot_dimension_numbers<[1], [0], [0], [1], [0, 0, 1, 1], [], []>} : vector<8x36xbf16>, vector<36x256xbf16>, vector<8x256xf32> -> vector<8x256xf32>
    %c0_39 = arith.constant 0 : index
    %c0_40 = arith.constant 0 : index
    %66 = vector.load %arg4[%c0_39, %c0_40] : memref<8x1xf32, #tpu.memory_space<vmem>>, vector<8x1xf32>
    %67 = vector.broadcast %66 : vector<8x1xf32> to vector<8x256xf32>
    %68 = arith.mulf %65, %67 : vector<8x256xf32>
    %c0_41 = arith.constant 0 : index
    %c0_42 = arith.constant 0 : index
    %69 = vector.load %arg5[%c0_41, %c0_42] : memref<8x1xf32, #tpu.memory_space<vmem>>, vector<8x1xf32>
    %70 = vector.broadcast %69 : vector<8x1xf32> to vector<8x256xf32>
    %71 = arith.addf %68, %70 : vector<8x256xf32>
    %cst_43 = arith.constant 0.000000e+00 : f32
    %72 = vector.broadcast %cst_43 : f32 to vector<8x256xf32>
    %73 = arith.maximumf %71, %72 : vector<8x256xf32>
    %74 = arith.truncf %73 : vector<8x256xf32> to vector<8x256xbf16>
    %c0_44 = arith.constant 0 : index
    %c0_45 = arith.constant 0 : index
    %c0_46 = arith.constant 0 : index
    %75 = vector.load %arg6[%c0_44, %c0_45, %c0_46] : memref<2x8x256xbf16, #tpu.memory_space<vmem>>, vector<1x8x256xbf16>
    %76 = vector.shape_cast %75 : vector<1x8x256xbf16> to vector<8x256xbf16>
    %77 = vector.shape_cast %74 : vector<8x256xbf16> to vector<1x8x256xbf16>
    tpu.vector_store %arg6[%c0_44, %c0_45, %c0_46], %77 {strides = array<i32>} : memref<2x8x256xbf16, #tpu.memory_space<vmem>>, vector<1x8x256xbf16>,
    %c1_47 = arith.constant 1 : index
    %c0_48 = arith.constant 0 : index
    %c0_49 = arith.constant 0 : index
    %78 = vector.load %arg2[%c1_47, %c0_48, %c0_49] : memref<2x4x256xf32, #tpu.memory_space<vmem>>, vector<1x4x256xf32>
    %79 = vector.shape_cast %78 : vector<1x4x256xf32> to vector<4x256xf32>
    %c0_50 = arith.constant 0 : index
    %c128_51 = arith.constant 128 : index
    %80 = vector.load %arg7[%c0_50, %c128_51] : memref<4x401xf32, #tpu.memory_space<vmem>>, vector<4x256xf32>
    tpu.vector_store %arg7[%c0_50, %c128_51], %79 {strides = array<i32>} : memref<4x401xf32, #tpu.memory_space<vmem>>, vector<4x256xf32>,
    %c0_52 = arith.constant 0 : index
    %c111_53 = arith.constant 111 : index
    %81 = vector.load %arg7[%c0_52, %c111_53] : memref<4x401xf32, #tpu.memory_space<vmem>>, vector<4x256xf32>
    %cst_54 = arith.constant 0.000000e+00 : f32
    %82 = vector.shape_cast %5 : vector<1x256xi1> to vector<1x256xi1>
    %83 = vector.broadcast %82 : vector<1x256xi1> to vector<4x256xi1>
    %84 = vector.broadcast %cst_54 : f32 to vector<4x256xf32>
    %85 = arith.select %83, %81, %84 : vector<4x256xi1>, vector<4x256xf32>
    %86 = arith.truncf %85 : vector<4x256xf32> to vector<4x256xbf16>
    %c0_55 = arith.constant 0 : index
    %c0_56 = arith.constant 0 : index
    %87 = vector.load %arg8[%c0_55, %c0_56] : memref<36x256xbf16, #tpu.memory_space<vmem>>, vector<4x256xbf16>
    tpu.vector_store %arg8[%c0_55, %c0_56], %86 {strides = array<i32>} : memref<36x256xbf16, #tpu.memory_space<vmem>>, vector<4x256xbf16>,
    %c0_57 = arith.constant 0 : index
    %c112_58 = arith.constant 112 : index
    %88 = vector.load %arg7[%c0_57, %c112_58] : memref<4x401xf32, #tpu.memory_space<vmem>>, vector<4x256xf32>
    %89 = arith.truncf %88 : vector<4x256xf32> to vector<4x256xbf16>
    %c4_59 = arith.constant 4 : index
    %c0_60 = arith.constant 0 : index
    %90 = vector.load %arg8[%c4_59, %c0_60] : memref<36x256xbf16, #tpu.memory_space<vmem>>, vector<4x256xbf16>
    tpu.vector_store %arg8[%c4_59, %c0_60], %89 {strides = array<i32>} : memref<36x256xbf16, #tpu.memory_space<vmem>>, vector<4x256xbf16>,
    %c0_61 = arith.constant 0 : index
    %c113_62 = arith.constant 113 : index
    %91 = vector.load %arg7[%c0_61, %c113_62] : memref<4x401xf32, #tpu.memory_space<vmem>>, vector<4x256xf32>
    %cst_63 = arith.constant 0.000000e+00 : f32
    %92 = vector.shape_cast %8 : vector<1x256xi1> to vector<1x256xi1>
    %93 = vector.broadcast %92 : vector<1x256xi1> to vector<4x256xi1>
    %94 = vector.broadcast %cst_63 : f32 to vector<4x256xf32>
    %95 = arith.select %93, %91, %94 : vector<4x256xi1>, vector<4x256xf32>
    %96 = arith.truncf %95 : vector<4x256xf32> to vector<4x256xbf16>
    %c8_64 = arith.constant 8 : index
    %c0_65 = arith.constant 0 : index
    %97 = vector.load %arg8[%c8_64, %c0_65] : memref<36x256xbf16, #tpu.memory_space<vmem>>, vector<4x256xbf16>
    tpu.vector_store %arg8[%c8_64, %c0_65], %96 {strides = array<i32>} : memref<36x256xbf16, #tpu.memory_space<vmem>>, vector<4x256xbf16>,
    %c0_66 = arith.constant 0 : index
    %c127_67 = arith.constant 127 : index
    %98 = vector.load %arg7[%c0_66, %c127_67] : memref<4x401xf32, #tpu.memory_space<vmem>>, vector<4x256xf32>
    %cst_68 = arith.constant 0.000000e+00 : f32
    %99 = vector.shape_cast %5 : vector<1x256xi1> to vector<1x256xi1>
    %100 = vector.broadcast %99 : vector<1x256xi1> to vector<4x256xi1>
    %101 = vector.broadcast %cst_68 : f32 to vector<4x256xf32>
    %102 = arith.select %100, %98, %101 : vector<4x256xi1>, vector<4x256xf32>
    %103 = arith.truncf %102 : vector<4x256xf32> to vector<4x256xbf16>
    %c12_69 = arith.constant 12 : index
    %c0_70 = arith.constant 0 : index
    %104 = vector.load %arg8[%c12_69, %c0_70] : memref<36x256xbf16, #tpu.memory_space<vmem>>, vector<4x256xbf16>
    tpu.vector_store %arg8[%c12_69, %c0_70], %103 {strides = array<i32>} : memref<36x256xbf16, #tpu.memory_space<vmem>>, vector<4x256xbf16>,
    %c0_71 = arith.constant 0 : index
    %c128_72 = arith.constant 128 : index
    %105 = vector.load %arg7[%c0_71, %c128_72] : memref<4x401xf32, #tpu.memory_space<vmem>>, vector<4x256xf32>
    %106 = arith.truncf %105 : vector<4x256xf32> to vector<4x256xbf16>
    %c16_73 = arith.constant 16 : index
    %c0_74 = arith.constant 0 : index
    %107 = vector.load %arg8[%c16_73, %c0_74] : memref<36x256xbf16, #tpu.memory_space<vmem>>, vector<4x256xbf16>
    tpu.vector_store %arg8[%c16_73, %c0_74], %106 {strides = array<i32>} : memref<36x256xbf16, #tpu.memory_space<vmem>>, vector<4x256xbf16>,
    %c0_75 = arith.constant 0 : index
    %c129_76 = arith.constant 129 : index
    %108 = vector.load %arg7[%c0_75, %c129_76] : memref<4x401xf32, #tpu.memory_space<vmem>>, vector<4x256xf32>
    %cst_77 = arith.constant 0.000000e+00 : f32
    %109 = vector.shape_cast %8 : vector<1x256xi1> to vector<1x256xi1>
    %110 = vector.broadcast %109 : vector<1x256xi1> to vector<4x256xi1>
    %111 = vector.broadcast %cst_77 : f32 to vector<4x256xf32>
    %112 = arith.select %110, %108, %111 : vector<4x256xi1>, vector<4x256xf32>
    %113 = arith.truncf %112 : vector<4x256xf32> to vector<4x256xbf16>
    %c20_78 = arith.constant 20 : index
    %c0_79 = arith.constant 0 : index
    %114 = vector.load %arg8[%c20_78, %c0_79] : memref<36x256xbf16, #tpu.memory_space<vmem>>, vector<4x256xbf16>
    tpu.vector_store %arg8[%c20_78, %c0_79], %113 {strides = array<i32>} : memref<36x256xbf16, #tpu.memory_space<vmem>>, vector<4x256xbf16>,
    %c0_80 = arith.constant 0 : index
    %c143_81 = arith.constant 143 : index
    %115 = vector.load %arg7[%c0_80, %c143_81] : memref<4x401xf32, #tpu.memory_space<vmem>>, vector<4x256xf32>
    %cst_82 = arith.constant 0.000000e+00 : f32
    %116 = vector.shape_cast %5 : vector<1x256xi1> to vector<1x256xi1>
    %117 = vector.broadcast %116 : vector<1x256xi1> to vector<4x256xi1>
    %118 = vector.broadcast %cst_82 : f32 to vector<4x256xf32>
    %119 = arith.select %117, %115, %118 : vector<4x256xi1>, vector<4x256xf32>
    %120 = arith.truncf %119 : vector<4x256xf32> to vector<4x256xbf16>
    %c24_83 = arith.constant 24 : index
    %c0_84 = arith.constant 0 : index
    %121 = vector.load %arg8[%c24_83, %c0_84] : memref<36x256xbf16, #tpu.memory_space<vmem>>, vector<4x256xbf16>
    tpu.vector_store %arg8[%c24_83, %c0_84], %120 {strides = array<i32>} : memref<36x256xbf16, #tpu.memory_space<vmem>>, vector<4x256xbf16>,
    %c0_85 = arith.constant 0 : index
    %c144_86 = arith.constant 144 : index
    %122 = vector.load %arg7[%c0_85, %c144_86] : memref<4x401xf32, #tpu.memory_space<vmem>>, vector<4x256xf32>
    %123 = arith.truncf %122 : vector<4x256xf32> to vector<4x256xbf16>
    %c28_87 = arith.constant 28 : index
    %c0_88 = arith.constant 0 : index
    %124 = vector.load %arg8[%c28_87, %c0_88] : memref<36x256xbf16, #tpu.memory_space<vmem>>, vector<4x256xbf16>
    tpu.vector_store %arg8[%c28_87, %c0_88], %123 {strides = array<i32>} : memref<36x256xbf16, #tpu.memory_space<vmem>>, vector<4x256xbf16>,
    %c0_89 = arith.constant 0 : index
    %c145_90 = arith.constant 145 : index
    %125 = vector.load %arg7[%c0_89, %c145_90] : memref<4x401xf32, #tpu.memory_space<vmem>>, vector<4x256xf32>
    %cst_91 = arith.constant 0.000000e+00 : f32
    %126 = vector.shape_cast %8 : vector<1x256xi1> to vector<1x256xi1>
    %127 = vector.broadcast %126 : vector<1x256xi1> to vector<4x256xi1>
    %128 = vector.broadcast %cst_91 : f32 to vector<4x256xf32>
    %129 = arith.select %127, %125, %128 : vector<4x256xi1>, vector<4x256xf32>
    %130 = arith.truncf %129 : vector<4x256xf32> to vector<4x256xbf16>
    %c32_92 = arith.constant 32 : index
    %c0_93 = arith.constant 0 : index
    %131 = vector.load %arg8[%c32_92, %c0_93] : memref<36x256xbf16, #tpu.memory_space<vmem>>, vector<4x256xbf16>
    tpu.vector_store %arg8[%c32_92, %c0_93], %130 {strides = array<i32>} : memref<36x256xbf16, #tpu.memory_space<vmem>>, vector<4x256xbf16>,
    %c0_94 = arith.constant 0 : index
    %c0_95 = arith.constant 0 : index
    %132 = vector.load %arg3[%c0_94, %c0_95] : memref<8x36xbf16, #tpu.memory_space<vmem>>, vector<8x36xbf16>
    %c0_96 = arith.constant 0 : index
    %c0_97 = arith.constant 0 : index
    %133 = vector.load %arg8[%c0_96, %c0_97] : memref<36x256xbf16, #tpu.memory_space<vmem>>, vector<36x256xbf16>
    %cst_98 = arith.constant dense<0.000000e+00> : vector<8x256xf32>
    %134 = tpu.matmul %132, %133, %cst_98 {dimension_numbers = #tpu.dot_dimension_numbers<[1], [0], [0], [1], [0, 0, 1, 1], [], []>} : vector<8x36xbf16>, vector<36x256xbf16>, vector<8x256xf32> -> vector<8x256xf32>
    %c0_99 = arith.constant 0 : index
    %c0_100 = arith.constant 0 : index
    %135 = vector.load %arg4[%c0_99, %c0_100] : memref<8x1xf32, #tpu.memory_space<vmem>>, vector<8x1xf32>
    %136 = vector.broadcast %135 : vector<8x1xf32> to vector<8x256xf32>
    %137 = arith.mulf %134, %136 : vector<8x256xf32>
    %c0_101 = arith.constant 0 : index
    %c0_102 = arith.constant 0 : index
    %138 = vector.load %arg5[%c0_101, %c0_102] : memref<8x1xf32, #tpu.memory_space<vmem>>, vector<8x1xf32>
    %139 = vector.broadcast %138 : vector<8x1xf32> to vector<8x256xf32>
    %140 = arith.addf %137, %139 : vector<8x256xf32>
    %cst_103 = arith.constant 0.000000e+00 : f32
    %141 = vector.broadcast %cst_103 : f32 to vector<8x256xf32>
    %142 = arith.maximumf %140, %141 : vector<8x256xf32>
    %143 = arith.truncf %142 : vector<8x256xf32> to vector<8x256xbf16>
    %c1_104 = arith.constant 1 : index
    %c0_105 = arith.constant 0 : index
    %c0_106 = arith.constant 0 : index
    %144 = vector.load %arg6[%c1_104, %c0_105, %c0_106] : memref<2x8x256xbf16, #tpu.memory_space<vmem>>, vector<1x8x256xbf16>
    %145 = vector.shape_cast %144 : vector<1x8x256xbf16> to vector<8x256xbf16>
    %146 = vector.shape_cast %143 : vector<8x256xbf16> to vector<1x8x256xbf16>
    tpu.vector_store %arg6[%c1_104, %c0_105, %c0_106], %146 {strides = array<i32>} : memref<2x8x256xbf16, #tpu.memory_space<vmem>>, vector<1x8x256xbf16>,
    return
  }
  func.func @transform_0(%arg0: i32) -> (i32, i32) {
    %c0_i32 = arith.constant 0 : i32
    %c0_i32_0 = arith.constant 0 : i32
    %c0_i32_1 = arith.constant 0 : i32
    return %c0_i32, %c0_i32_0 : i32, i32
  }
  func.func @transform_1(%arg0: i32) -> (i32, i32, i32) {
    %c0_i32 = arith.constant 0 : i32
    %c0_i32_0 = arith.constant 0 : i32
    %c0_i32_1 = arith.constant 0 : i32
    return %arg0, %c0_i32, %c0_i32_0 : i32, i32, i32
  }
  func.func @transform_2(%arg0: i32) -> (i32, i32) {
    %c0_i32 = arith.constant 0 : i32
    %c0_i32_0 = arith.constant 0 : i32
    %c0_i32_1 = arith.constant 0 : i32
    return %c0_i32, %c0_i32_0 : i32, i32
  }
  func.func @transform_3(%arg0: i32) -> (i32, i32) {
    %c0_i32 = arith.constant 0 : i32
    %c0_i32_0 = arith.constant 0 : i32
    %c0_i32_1 = arith.constant 0 : i32
    return %c0_i32, %c0_i32_0 : i32, i32
  }
  func.func @transform_4(%arg0: i32) -> (i32, i32) {
    %c0_i32 = arith.constant 0 : i32
    %c0_i32_0 = arith.constant 0 : i32
    %c0_i32_1 = arith.constant 0 : i32
    return %c0_i32, %c0_i32_0 : i32, i32
  }
  func.func @transform_5(%arg0: i32) -> (i32, i32, i32) {
    %c0_i32 = arith.constant 0 : i32
    %c0_i32_0 = arith.constant 0 : i32
    %c0_i32_1 = arith.constant 0 : i32
    return %arg0, %c0_i32, %c0_i32_0 : i32, i32, i32
  }
}

</mosaic_0001>

<bundles_post_ra>
// kernel: tpu_custom_call.1
= control target key start
LH: loop header
LB: loop body
LE: loop exit
PB: predicated region body
PF: predicated region fallthrough
CT: control target
= control target key end

     0   :  { %10 = vsyncpa [#allocation5], 0  ;;  %s1233_s0 = inlined_call_operand.hbm [shape: s32[2,256], index: 0, kind: input, shape index: {}]   ;;  %s1234_s1 = inlined_call_operand.vmem [shape: f32[2,4,256], index: 1, kind: input, shape index: {}]   ;;  %s1235_s2 = inlined_call_operand.vmem [shape: bf16[8,36], index: 2, kind: input, shape index: {}]   ;;  %s1236_s3 = inlined_call_operand.vmem [shape: f32[8,1], index: 3, kind: input, shape index: {}]   ;;  %s1237_s4 = inlined_call_operand.vmem [shape: f32[8,1], index: 4, kind: input, shape index: {}]   ;;  %s1238_s5 = inlined_call_operand.hbm [shape: bf16[2,8,256], index: 5, kind: output, shape index: {}]  }
   0x1   :  { %11 = vsyncpa [#allocation6], 0  ;;  %s1001_s18 = smov [#allocation4]  }
   0x2   :  { %s18_s19 = sshll.u32 %s1001_s18, 4  ;;  %s19_s19 = int_to_ptr.vmem [resolvable:$true] %s18_s19 }
   0x3   :  { %s965_s20 = scalar_lea.vmem %s19_s19, 64  ;;  %p970_p1 = scmp.lt.s32.totalorder %s19_s19, %s19_s19 }
   0x4   :  { %p966_p0 = scmp.ne.s32.totalorder %s19_s19, %s965_s20  ;;  %p971_p2 = scmp.lt.s32.totalorder %s965_s20, %s965_s20 }
   0x6   :  { %p972_p3 = por %p971_p2, %p970_p1 }
   0x8   :  { %p973_p4 = pnand %p972_p3, %p966_p0 }
   0xa   :  { %976 = shalt.err (!%p973_p4)
}
   0xb   :  { %21 = dma.hbm_to_vmem [thread:$0]  %s1233_s0, 64, %s19_s19, [#allocation5]  }
   0xc   :  { %997 = dma.done.wait [#allocation5], 64  }
   0xd   :  { %998 = vsyncadd [#allocation5], 4294967232  ;;  %vm39_vm0 = vcmask 1043456   ;;  %vm40_vm1 = vcmask 138244   ;;  %v1002_v0 = vmov 0.0   ;;  %v1003_v1 = vmov 0  }
   0xe   :  { %vm41_vm2 = vmor %vm40_vm1, %vm39_vm0  ;;  %38 = vst [vmem:[#allocation2] sm:$0xff] %v1002_v0  ;;  %382 = vmatprep.mubr.bf16.mxu0 %v1003_v1  ;;  %720 = vmatprep.mubr.bf16.mxu1 %v1003_v1  ;;  %v48_v2 = vld [vmem:[%s1234_s1] sm:$0xff]  ;;  %s1004_s24 = smov 111   ;;  %s1005_s25 = smov 112   ;;  %v794_v9 = vld [vmem:[%s1234_s1 + $0x8] sm:$0xff]  ;;  %v53_v57 = vlaneseq  ;;  %vm208_vm5 = vcmask 1039360  }
   0xf   :  { %42 = vst.msk [vmem:[#allocation2 + $0x8] sm:$0xff] %vm41_vm2, %v1002_v0  ;;  %938 = vset.pattern.permute.xlu1 %v1003_v1  ;;  %939 = vset.pattern.permute.xlu0 %v1003_v1  ;;  %v285_v3 = vcombine.high %v48_v2, %v48_v2  ;;  %s1006_s28 = smov 113   ;;  %s1007_s29 = smov 127   ;;  %v545_v31 = vcombine.high %v794_v9, %v794_v9  ;;  %v391_v55 = vld [vmem:[%s1236_s3] sm:$0xff]  ;;  %vm292_vm6 = vcmask 908288   ;;  %vm236_vm7 = vcmask 924672  }
  0x10   :  { %49 = vst [vmem:[#allocation2 + $0x4] sm:$0xff] %v48_v2  ;;  %s1008_s30 = smov 1   ;;  %s1009_s1 = smov 16   ;;  %v399_v56 = vld [vmem:[%s1237_s4] sm:$0xff]  ;;  %v54_v62 = vshrl.u32 %v53_v57, 7  ;;  %vm167_vm11 = vcmask 7168  }
  0x11   :  { %v853_v6 = vpack.i.bf16 %v285_v3, %v48_v2  ;;  %v823_v7 = vpack.c.bf16 %v285_v3, %v48_v2  ;;  %s1010_s6 = smov 17   ;;  %s1011_s7 = smov 15   ;;  %v1075_v38 = vpack.c.bf16 %v545_v31, %v794_v9  ;;  %v46_v60 = vld [vmem:[#allocation4 + $0x1] ss:$2 sm:$0x3]  ;;  %vm277_vm12 = vcmask 916480  }
  0x12   :  { %v43_v61 = vld [vmem:[#allocation4] ss:$2 sm:$0x3]  ;;  %vm47_vm3 = vcmp.ne.s32.totalorder %v46_v60, 0  ;;  %v59_v2 = vsub.s32 1, %v54_v62  ;;  %v55_v3 = vsub.s32 0, %v54_v62 }
  0x13   :  { %854 = vrot.lane.b32.xlu0 %v853_v6, %s1004_s24  ;;  %196 = vst [vmem:[#allocation3 + $0x20] sm:$0x33] %v823_v7  ;;  %v268_v22 = vrot.slane %v823_v7, 6  ;;  %v610_v41 = vrot.slane %v1075_v38, 6  ;;  %vm44_vm4 = vcmp.ne.s32.totalorder %v43_v61, 0  ;;  %vm114_vm14 = vcmask 130048  }
  0x14   :  { %vm72_vm15 = vcmask 138240   ;;  %vm140_vm1 = vcmask 121856   ;;  %vm343_vm2 = vcmask 1041408  }
  0x16   :  { %v253_v4 = vld [vmem:[#allocation2 + $0xc] sm:$0xf] }
  0x17   :  { %v824_v5 = vpack.c.bf16 %v253_v4, %v253_v4  ;;  %v50_v10 = vld [vmem:[#allocation2] sm:$0xff]  ;;  %v51_v11 = vld [vmem:[#allocation2 + $0x8] sm:$0xf]  ;;  %864 = vrot.lane.b32.xlu0 %v853_v6, %s1006_s28  ;;  %v198_v19 = vld [vmem:[#allocation2 + $0xc] sm:$0xf] }
  0x18   :  { %v119_v12 = vld [vmem:[#allocation2 + $0x8] sm:$0xf]  ;;  %v160_v15 = vcombine.high %v50_v10, %v50_v10  ;;  %v888_v20 = vpack.i.bf16 %v794_v9, %v198_v19  ;;  %v226_v21 = vld [vmem:[#allocation2 + $0xc] sm:$0xf] }
  0x19   :  { %v269_v8 = vrot.slane %v824_v5, 6  ;;  %v157_v13 = vld [vmem:[#allocation2 + $0x8] sm:$0xf]  ;;  %v893_v24 = vpack.i.bf16 %v794_v9, %v226_v21  ;;  %v282_v27 = vld [vmem:[#allocation2 + $0xc] sm:$0xf]  ;;  %v120_v5 = vsel %vm47_vm3, 1, %v1003_v1 }
  0x1a   :  { %v89_v14 = vld [vmem:[#allocation2 + $0x8] sm:$0xf]  ;;  %v868_v17 = vpack.i.bf16 %v160_v15, %v50_v10  ;;  %v816_v23 = vpack.c.bf16 %v160_v15, %v50_v10  ;;  %v878_v29 = vpack.i.bf16 %v794_v9, %v282_v27  ;;  %v623_v32 = vld [vmem:[#allocation2 + $0xc] sm:$0xf]  ;;  %vm339_vm3 = vcmask 293888  }
  0x1b   :  { %272 = vrot.lane.b32.xlu1 %v269_v8, %s1005_s25  ;;  %v817_v16 = vpack.c.bf16 %v89_v14, %v89_v14  ;;  %420 = vst [vmem:[#allocation2 + $0x4] sm:$0xff] %v794_v9  ;;  %v542_v33 = vld [vmem:[#allocation2 + $0xc] sm:$0xf]  ;;  %v908_v34 = vpack.i.bf16 %v623_v32, %v545_v31  ;;  %v1101_v8 = vrot.slane %v120_v5, %v59_v2 }
  0x1c   :  { %869 = vrot.lane.b32.xlu0 %v868_v17, %s1008_s30  ;;  %v104_v26 = vrot.slane %v816_v23, 6  ;;  %v569_v35 = vld [vmem:[#allocation2 + $0xc] sm:$0xf]  ;;  %v913_v37 = vpack.i.bf16 %v542_v33, %v545_v31 }
  0x1d   :  { %v105_v18 = vrot.slane %v817_v16, 6  ;;  %v595_v36 = vld [vmem:[#allocation2 + $0xc] sm:$0xf]  ;;  %v918_v39 = vpack.i.bf16 %v569_v35, %v545_v31  ;;  %vm130_vm8 = vcmp.eq.s32.totalorder %v1101_v8, 1 }
  0x1e   :  { %v836_v40 = vpack.c.bf16 %v595_v36, %v595_v36 }
  0x1f   :  { %859 = vrot.lane.b32.xlu1 %v853_v6, %s1007_s29  ;;  %v52_v6 = vsel %vm44_vm4, 1, %v1003_v1 }
  0x20   :  { %874 = vrot.lane.b32.xlu0 %v868_v17, %s1010_s6  ;;  %v611_v44 = vrot.slane %v836_v40, 6  ;;  %v1109_v14 = vrot.slane %v52_v6, %v59_v2 }
  0x22   :  { %v501_v25 = vld [vmem:[#allocation2] sm:$0xff]  ;;  %v502_v43 = vld [vmem:[#allocation2 + $0x8] sm:$0xf]  ;;  %vm62_vm13 = vcmp.eq.s32.totalorder %v1109_v14, 1 }
  0x23   :  { %108 = vrot.lane.b32.xlu1 %v105_v18, %s1009_s1  ;;  %v898_v28 = vpack.i.bf16 %v501_v25, %v157_v13  ;;  %v903_v30 = vpack.i.bf16 %v501_v25, %v51_v11  ;;  %v505_v42 = vcombine.high %v501_v25, %v501_v25  ;;  %v422_v45 = vld [vmem:[#allocation2 + $0x8] sm:$0xf]  ;;  %v1103_v11 = vrot.slane %v120_v5, %v55_v3 }
  0x24   :  { %270 = vrot.lane.b32.xlu0 %v268_v22, %s1005_s25  ;;  %v448_v46 = vld [vmem:[#allocation2 + $0x8] sm:$0xf] }
  0x25   :  { %v923_v47 = vpack.i.bf16 %v502_v43, %v505_v42  ;;  %v828_v48 = vpack.c.bf16 %v505_v42, %v501_v25  ;;  %v928_v49 = vpack.i.bf16 %v422_v45, %v505_v42  ;;  %v829_v50 = vpack.c.bf16 %v448_v46, %v448_v46  ;;  %v476_v54 = vld [vmem:[#allocation2 + $0x8] sm:$0xf] }
  0x26   :  { %v933_v53 = vpack.i.bf16 %v505_v42, %v501_v25  ;;  %vm129_vm9 = vcmp.eq.s32.totalorder %v1103_v11, 1 }
  0x27   :  { %889 = vrot.lane.b32.xlu1 %v888_v20, %s1007_s29  ;;  %v463_v51 = vrot.slane %v828_v48, 6  ;;  %v464_v52 = vrot.slane %v829_v50, 6 }
  0x28   :  { %106 = vrot.lane.b32.xlu0 %v104_v26, %s1009_s1 }
  0x2b   :  { %894 = vrot.lane.b32.xlu1 %v893_v24, %s1006_s28 }
  0x2c   :  { %879 = vrot.lane.b32.xlu0 %v878_v29, %s1004_s24 }
  0x2f   :  { %899 = vrot.lane.b32.xlu1 %v898_v28, %s1008_s30 }
  0x30   :  { %884 = vrot.lane.b32.xlu0 %v868_v17, %s1011_s7 }
  0x33   :  { %904 = vrot.lane.b32.xlu1 %v903_v30, %s1010_s6 }
  0x34   :  { %909 = vrot.lane.b32.xlu0 %v908_v34, %s1004_s24 }
  0x37   :  { %138 = vrot.lane.b32.xlu1 %v119_v12, %s1011_s7  ;;  %v1105_v12 = vrot.slane %v52_v6, %v55_v3 }
  0x38   :  { %919 = vrot.lane.b32.xlu0 %v918_v39, %s1006_s28 }
  0x39   :  { %vm61_vm10 = vcmp.eq.s32.totalorder %v1105_v12, 1 }
  0x3b   :  { %914 = vrot.lane.b32.xlu1 %v913_v37, %s1007_s29 }
  0x3c   :  { %614 = vrot.lane.b32.xlu0 %v611_v44, %s1005_s25 }
  0x3f   :  { %612 = vrot.lane.b32.xlu1 %v610_v41, %s1005_s25 }
  0x40   :  { %929 = vrot.lane.b32.xlu0 %v928_v49, %s1010_s6 }
  0x43   :  { %924 = vrot.lane.b32.xlu1 %v923_v47, %s1008_s30 }
  0x44   :  { %467 = vrot.lane.b32.xlu0 %v464_v52, %s1009_s1 }
  0x47   :  { %465 = vrot.lane.b32.xlu1 %v463_v51, %s1009_s1 }
  0x48   :  { %484 = vrot.lane.b32.xlu0 %v476_v54, %s1011_s7 }
  0x4b   :  { %934 = vrot.lane.b32.xlu1 %v933_v53, %s1011_s7 }
  0x4c   :  { %732 = vperm.xlu0 %939, %v391_v55  }
  0x4f   :  { %394 = vperm.xlu1 %938, %v391_v55  }
  0x53   :  { %402 = vperm.xlu1 %938, %v399_v56  }
  0x57   :  { %740 = vperm.xlu1 %938, %v399_v56  }
  0x85   :  { %v1095_v58 = vpop.permute.xlu0 %854 }
  0x86   :  { %v857_v32 = vunpack.i.h.bf16 %v1095_v58  ;;  %v856_v33 = vunpack.i.l.bf16 %v1095_v58 }
  0x88   :  { %v293_v52 = vsel %vm292_vm6, %v856_v33, %v857_v32 }
  0x89   :  { %v865_v63 = vpop.permute.xlu0 %864  ;;  %v297_v62 = vsel %vm129_vm9, %v293_v52, 0.0 }
  0x8a   :  { %v867_v16 = vunpack.i.h.bf16 %v865_v63  ;;  %v866_v17 = vunpack.i.l.bf16 %v865_v63 }
  0x8c   :  { %v237_v28 = vsel %vm236_vm7, %v866_v17, %v867_v16 }
  0x8d   :  { %v273_v59 = vpop.permute.xlu1 %272  ;;  %v241_v41 = vsel %vm61_vm10, %v237_v28, 0.0 }
  0x8e   :  { %v1097_v4 = vpop.permute.xlu0 %869  ;;  %v275_v20 = vrot.slane %v273_v59, 4 }
  0x8f   :  { %v872_v24 = vunpack.i.h.bf16 %v1097_v4  ;;  %v871_v25 = vunpack.i.l.bf16 %v1097_v4 }
  0x91   :  { %v860_v0 = vpop.permute.xlu1 %859  ;;  %v168_v42 = vsel %vm167_vm11, %v871_v25, %v872_v24 }
  0x92   :  { %v862_v9 = vunpack.i.h.bf16 %v860_v0  ;;  %v861_v10 = vunpack.i.l.bf16 %v860_v0  ;;  %v1107_v13 = vpop.permute.xlu0 %874  ;;  %v172_v55 = vsel %vm61_vm10, %v168_v42, 0.0 }
  0x93   :  { %v877_v44 = vunpack.i.h.bf16 %v1107_v13  ;;  %v876_v47 = vunpack.i.l.bf16 %v1107_v13 }
  0x94   :  { %v209_v1 = vsel %vm208_vm5, %v861_v10, %v862_v9 }
  0x95   :  { %v109_v7 = vpop.permute.xlu1 %108  ;;  %v213_v23 = vsel %vm129_vm9, %v209_v1, 0.0  ;;  %v73_v58 = vsel %vm72_vm15, %v876_v47, %v877_v44 }
  0x96   :  { %v271_v19 = vpop.permute.xlu0 %270  ;;  %v111_v36 = vrot.slane %v109_v7, 4  ;;  %v77_v6 = vsel %vm61_vm10, %v73_v58, 0.0 }
  0x97   :  { %v274_v22 = vrot.slane %v271_v19, 4 }
  0x99   :  { %v1112_v15 = vpop.permute.xlu1 %889  ;;  %v276_v31 = vsel %vm39_vm0, %v274_v22, %v275_v20 }
  0x9a   :  { %v891_v18 = vunpack.i.l.bf16 %v1112_v15  ;;  %v278_v34 = vsel %vm277_vm12, %v271_v19, %v276_v31  ;;  %v107_v35 = vpop.permute.xlu0 %106 }
  0x9b   :  { %280 = vst [vmem:[#allocation3 + $0x10] sm:$0xcc] %v278_v34  ;;  %v110_v40 = vrot.slane %v107_v35, 4 }
  0x9c   :  { %v210_v21 = vsel %vm208_vm5, %v862_v9, %v891_v18 }
  0x9d   :  { %v214_v26 = vsel %vm130_vm8, %v210_v21, 0.0  ;;  %v1126_v27 = vpop.permute.xlu1 %894  ;;  %v113_v49 = vsel %vm39_vm0, %v110_v40, %v111_v36 }
  0x9e   :  { %v821_v29 = vpack.c.bf16 %v214_v26, %v213_v23  ;;  %v896_v30 = vunpack.i.l.bf16 %v1126_v27  ;;  %v115_v50 = vsel %vm114_vm14, %v107_v35, %v113_v49  ;;  %v880_v51 = vpop.permute.xlu0 %879 }
  0x9f   :  { %117 = vst [vmem:[#allocation3 + $0x8] sm:$0xcc] %v115_v50  ;;  %v881_v54 = vunpack.i.l.bf16 %v880_v51  ;;  %v882_v20 = vunpack.i.h.bf16 %v880_v51 }
  0xa0   :  { %v222_v37 = vrot.slane %v821_v29, 6  ;;  %v238_v39 = vsel %vm236_vm7, %v867_v16, %v896_v30 }
  0xa1   :  { %v242_v43 = vsel %vm62_vm13, %v238_v39, 0.0  ;;  %v1141_v45 = vpop.permute.xlu1 %899  ;;  %v294_v61 = vsel %vm292_vm6, %v857_v32, %v881_v54 }
  0xa2   :  { %224 = vst [vmem:[#allocation3 + $0x20] sm:$0xcc] %v222_v37  ;;  %v822_v46 = vpack.c.bf16 %v242_v43, %v241_v41  ;;  %v901_v48 = vunpack.i.l.bf16 %v1141_v45  ;;  %v298_v63 = vsel %vm130_vm8, %v294_v61, 0.0  ;;  %v885_v0 = vpop.permute.xlu0 %884  ;;  %v897_v37 = vunpack.i.h.bf16 %v1126_v27 }
  0xa3   :  { %v825_v4 = vpack.c.bf16 %v298_v63, %v297_v62  ;;  %v887_v5 = vunpack.i.h.bf16 %v885_v0  ;;  %v886_v10 = vunpack.i.l.bf16 %v885_v0 }
  0xa4   :  { %251 = vst [vmem:[#allocation3 + $0x10] sm:$0x33] %v822_v46  ;;  %v169_v53 = vsel %vm167_vm11, %v872_v24, %v901_v48  ;;  %v892_v24 = vunpack.i.h.bf16 %v1112_v15 }
  0xa5   :  { %v173_v56 = vsel %vm62_vm13, %v169_v53, 0.0  ;;  %v1153_v57 = vpop.permute.xlu1 %904  ;;  %307 = vst [vmem:[#allocation3 + $0x18] sm:$0x33] %v825_v4  ;;  %v141_v17 = vsel %vm140_vm1, %v886_v10, %v887_v5 }
  0xa6   :  { %v819_v59 = vpack.c.bf16 %v173_v56, %v172_v55  ;;  %v906_v60 = vunpack.i.l.bf16 %v1153_v57  ;;  %v910_v18 = vpop.permute.xlu0 %909  ;;  %v145_v21 = vsel %vm129_vm9, %v141_v17, 0.0 }
  0xa7   :  { %v912_v22 = vunpack.i.h.bf16 %v910_v18  ;;  %v911_v23 = vunpack.i.l.bf16 %v910_v18 }
  0xa8   :  { %v181_v2 = vrot.slane %v819_v59, 6  ;;  %v74_v3 = vsel %vm72_vm15, %v877_v44, %v906_v60  ;;  %v902_v60 = vunpack.i.h.bf16 %v1141_v45 }
  0xa9   :  { %v78_v7 = vsel %vm62_vm13, %v74_v3, 0.0  ;;  %v139_v9 = vpop.permute.xlu1 %138  ;;  %v633_v30 = vsel %vm292_vm6, %v882_v20, %v911_v23  ;;  %v634_v31 = vsel %vm292_vm6, %v911_v23, %v912_v22 }
  0xaa   :  { %183 = vst [vmem:[#allocation3] sm:$0xcc] %v181_v2  ;;  %v815_v13 = vpack.c.bf16 %v78_v7, %v77_v6  ;;  %v142_v1 = vsel %vm140_vm1, %v887_v5, %v139_v9  ;;  %v637_v32 = vsel %vm129_vm9, %v633_v30, 0.0  ;;  %v638_v33 = vsel %vm130_vm8, %v634_v31, 0.0  ;;  %v920_v34 = vpop.permute.xlu0 %919 }
  0xab   :  { %v146_v16 = vsel %vm130_vm8, %v142_v1, 0.0  ;;  %v945_v19 = vld [vmem:[#allocation3 + $0x24] ss:$-16 sps:$4 sm:$0xff]   ;;  %v837_v35 = vpack.c.bf16 %v638_v33, %v637_v32  ;;  %v922_v36 = vunpack.i.h.bf16 %v920_v34  ;;  %v921_v42 = vunpack.i.l.bf16 %v920_v34 }
  0xac   :  { %87 = vst [vmem:[#allocation3 + $0x8] sm:$0x33] %v815_v13  ;;  %540 = vst [vmem:[#allocation3 + $0x20] sm:$0x33] %v1075_v38  ;;  %v818_v26 = vpack.c.bf16 %v146_v16, %v145_v21  ;;  %v313_v43 = vld [vmem:[#allocation3 + $0x18] sm:$0x33]  ;;  %v907_v2 = vunpack.i.h.bf16 %v1153_v57 }
  0xad   :  { %v915_v25 = vpop.permute.xlu1 %914  ;;  %v790_v46 = vcombine.high %v313_v43, %v313_v43  ;;  %647 = vst [vmem:[#allocation3 + $0x18] sm:$0x33] %v837_v35  ;;  %v789_v47 = vcombine.low %v313_v43, %v313_v43  ;;  %v579_v49 = vsel %vm236_vm7, %v897_v37, %v921_v42  ;;  %v580_v50 = vsel %vm236_vm7, %v921_v42, %v922_v36  ;;  %v312_v55 = vld [vmem:[#allocation3 + $0x10] sm:$0xff] }
  0xae   :  { %v917_v28 = vunpack.i.h.bf16 %v915_v25  ;;  %v916_v29 = vunpack.i.l.bf16 %v915_v25  ;;  %155 = vst [vmem:[#allocation3] sm:$0x33] %v818_v26  ;;  %v615_v51 = vpop.permute.xlu0 %614  ;;  %v583_v52 = vsel %vm61_vm10, %v579_v49, 0.0  ;;  %v584_v53 = vsel %vm62_vm13, %v580_v50, 0.0 }
  0xaf   :  { %v617_v54 = vrot.slane %v615_v51, 4  ;;  %791 = vmatprep.subr.msk.bf16.mxu0 %vm343_vm2, %v790_v46  ;;  %v834_v58 = vpack.c.bf16 %v584_v53, %v583_v52  ;;  %v345_v59 = vsel %vm343_vm2, %v789_v47, 0 }
  0xb0   :  { %v552_v38 = vsel %vm208_vm5, %v892_v24, %v916_v29  ;;  %v553_v15 = vsel %vm208_vm5, %v916_v29, %v917_v28  ;;  %361 = vmatpush1.bf16.msra.mxu0 %v345_v59 }
  0xb1   :  { %v556_v39 = vsel %vm129_vm9, %v552_v38, 0.0  ;;  %v557_v40 = vsel %vm130_vm8, %v553_v15, 0.0  ;;  %v613_v41 = vpop.permute.xlu1 %612  ;;  %362 = vmatprep.subr.bf16.mxu0 %v945_v19  ;;  %593 = vst [vmem:[#allocation3 + $0x10] sm:$0x33] %v834_v58  ;;  %v308_v15 = vld [vmem:[%s1235_s2] sm:$0xf] }
  0xb2   :  { %v833_v44 = vpack.c.bf16 %v557_v40, %v556_v39  ;;  %v616_v48 = vrot.slane %v613_v41, 4  ;;  %v930_v4 = vpop.permute.xlu0 %929 }
  0xb3   :  { %v311_v0 = vld [vmem:[#allocation3 + $0x20] sm:$0xff]  ;;  %v932_v9 = vunpack.i.h.bf16 %v930_v4  ;;  %v931_v10 = vunpack.i.l.bf16 %v930_v4  ;;  %v309_v13 = vld [vmem:[#allocation3 + $0x8] sm:$0xff] }
  0xb4   :  { %v565_v27 = vrot.slane %v833_v44, 6  ;;  %v618_v63 = vsel %vm39_vm0, %v616_v48, %v617_v54  ;;  %v787_v5 = vcombine.low %v311_v0, %v312_v55  ;;  %v653_v18 = vld [vmem:[#allocation3 + $0x18] sm:$0x33]  ;;  %v648_v48 = vld [vmem:[%s1235_s2] sm:$0xf]  ;;  %s1012_s2 = smov [#allocation7]  }
  0xb5   :  { %v925_v56 = vpop.permute.xlu1 %924  ;;  %v619_v3 = vsel %vm277_vm12, %v613_v41, %v618_v63  ;;  %v310_v6 = vld [vmem:[#allocation3] sm:$0xff]  ;;  %v432_v20 = vsel %vm72_vm15, %v907_v2, %v931_v10  ;;  %v433_v21 = vsel %vm72_vm15, %v931_v10, %v932_v9  ;;  %v811_v26 = vcombine.high %v653_v18, %v653_v18  ;;  %s762_s14 = sshll.u32 %s1012_s2, 4  ;;  %s763_s14 = int_to_ptr.vmem [resolvable:$true] %s762_s14 }
  0xb6   :  { %v927_v61 = vunpack.i.h.bf16 %v925_v56  ;;  %v926_v62 = vunpack.i.l.bf16 %v925_v56  ;;  %567 = vst [vmem:[#allocation3 + $0x20] sm:$0xcc] %v565_v27  ;;  %621 = vst [vmem:[#allocation3 + $0x10] sm:$0xcc] %v619_v3  ;;  %v947_v17 = vld [vmem:[#allocation3 + $0xc] ss:$-8 sps:$4 sm:$0xff]   ;;  %363 = vmatpush1.bf16.msra.mxu0 %v787_v5  ;;  %v785_v22 = vcombine.low %v309_v13, %v310_v6  ;;  %v468_v25 = vpop.permute.xlu0 %467  ;;  %v810_v28 = vcombine.low %v653_v18, %v653_v18  ;;  %p982_p6 = scmp.lt.s32.totalorder %s763_s14, %s763_s14 }
  0xb7   :  { %v436_v23 = vsel %vm61_vm10, %v432_v20, 0.0  ;;  %v437_v24 = vsel %vm62_vm13, %v433_v21, 0.0  ;;  %364 = vmatprep.subr.bf16.mxu0 %v947_v17  ;;  %v470_v32 = vrot.slane %v468_v25, 4  ;;  %812 = vmatprep.subr.msk.bf16.mxu1 %vm343_vm2, %v811_v26  ;;  %s977_s15 = scalar_lea.vmem %s763_s14, 256 }
  0xb8   :  { %v512_v7 = vsel %vm167_vm11, %v902_v60, %v926_v62  ;;  %v513_v45 = vsel %vm167_vm11, %v926_v62, %v927_v61  ;;  %v827_v30 = vpack.c.bf16 %v437_v24, %v436_v23  ;;  %v683_v34 = vsel %vm343_vm2, %v810_v28, 0  ;;  %p978_p5 = scmp.ne.s32.totalorder %s763_s14, %s977_s15  ;;  %p983_p7 = scmp.lt.s32.totalorder %s977_s15, %s977_s15 }
  0xb9   :  { %v516_v1 = vsel %vm61_vm10, %v512_v7, 0.0  ;;  %v517_v57 = vsel %vm62_vm13, %v513_v45, 0.0  ;;  %v466_v16 = vpop.permute.xlu1 %465  ;;  %699 = vmatpush1.bf16.msra.mxu1 %v683_v34 }
  0xba   :  { %v831_v19 = vpack.c.bf16 %v517_v57, %v516_v1  ;;  %v469_v31 = vrot.slane %v466_v16, 4  ;;  %446 = vst [vmem:[#allocation3 + $0x8] sm:$0x33] %v827_v30  ;;  %365 = vmatpush1.bf16.msra.mxu0 %v785_v22  ;;  %v485_v36 = vpop.permute.xlu0 %484  ;;  %p984_p8 = por %p983_p7, %p982_p6 }
  0xbc   :  { %v525_v29 = vrot.slane %v831_v19, 6  ;;  %v471_v12 = vsel %vm39_vm0, %v469_v31, %v470_v32  ;;  %p985_p9 = pnand %p984_p8, %p978_p5 }
  0xbd   :  { %v935_v33 = vpop.permute.xlu1 %934  ;;  %v472_v35 = vsel %vm114_vm14, %v466_v16, %v471_v12  ;;  %v951_v37 = vld [vmem:[#allocation3 + $0x24] ss:$-16 sps:$4 sm:$0xff]   ;;  %v953_v39 = vld [vmem:[#allocation3 + $0x20] ss:$-16 sps:$4 sm:$0xff]   ;;  %792 = vmatmul.mubr.msk.bf16.vlgmr.msra.gmra.mxu0 %vm339_vm3, %v308_v15 }
  0xbe   :  { %527 = vst [vmem:[#allocation3] sm:$0xcc] %v525_v29  ;;  %v937_v38 = vunpack.i.h.bf16 %v935_v33  ;;  %v936_v14 = vunpack.i.l.bf16 %v935_v33  ;;  %474 = vst [vmem:[#allocation3 + $0x8] sm:$0xcc] %v472_v35  ;;  %700 = vmatprep.subr.bf16.mxu1 %v951_v37 }
  0xbf   :  { %701 = vmatpush1.bf16.msra.mxu1 %v953_v39 }
  0xc0   :  { %v486_v40 = vsel %vm140_vm1, %v936_v14, %v937_v38  ;;  %v487_v41 = vsel %vm140_vm1, %v937_v38, %v485_v36 }
  0xc1   :  { %v490_v42 = vsel %vm129_vm9, %v486_v40, 0.0  ;;  %v491_v43 = vsel %vm130_vm8, %v487_v41, 0.0 }
  0xc2   :  { %v830_v44 = vpack.c.bf16 %v491_v43, %v490_v42 }
  0xc4   :  { %500 = vst [vmem:[#allocation3] sm:$0x33] %v830_v44 }
  0xc7   :  { %v733_v60 = vpop.permute.xlu0 %732 }
  0xca   :  { %v395_v11 = vpop.permute.xlu1 %394 }
  0xcb   :  { %v954_v46 = vld [vmem:[#allocation3 + $0xc] ss:$-8 sps:$4 sm:$0xff]   ;;  %v956_v47 = vld [vmem:[#allocation3 + $0x8] ss:$-8 sps:$4 sm:$0xff]  }
  0xcc   :  { %702 = vmatprep.subr.bf16.mxu1 %v954_v46 }
  0xcd   :  { %703 = vmatpush1.bf16.msra.mxu1 %v956_v47 }
  0xce   :  { %v403_v50 = vpop.permute.xlu1 %402 }
  0xd0   :  { %813 = vmatmul.mubr.msk.bf16.vlgmr.msra.gmra.mxu1 %vm339_vm3, %v648_v48 }
  0xd2   :  { %v741_v63 = vpop.permute.xlu1 %740 }
 0x17d   :  { %v384_v49 = vpop.f32.mrf.mxu0 }
 0x17e   :  { %v397_v8 = vmul.f32 %v395_v11, %v384_v49 }
 0x17f   :  { %v386_v51 = vpop.f32.mrf.mxu0 }
 0x180   :  { %v405_v27 = vadd.f32 %v403_v50, %v397_v8  ;;  %v398_v52 = vmul.f32 %v395_v11, %v386_v51 }
 0x181   :  { %v388_v53 = vpop.f32.mrf.mxu0 }
 0x182   :  { %v407_v54 = vmax.f32 %v405_v27, 0.0  ;;  %v406_v55 = vadd.f32 %v403_v50, %v398_v52 }
 0x183   :  { %v389_v56 = vpop.f32.mrf.mxu0 }
 0x184   :  { %v408_v58 = vmax.f32 %v406_v55, 0.0 }
 0x186   :  { %v826_v59 = vpack.c.bf16 %v408_v58, %v407_v54 }
 0x188   :  { %417 = vst [vmem:[#allocation7] sm:$0xff] %v826_v59 }
 0x190   :  { %v722_v61 = vpop.f32.mrf.mxu1 }
 0x191   :  { %v735_v62 = vmul.f32 %v733_v60, %v722_v61 }
 0x192   :  { %v724_v0 = vpop.f32.mrf.mxu1 }
 0x193   :  { %v743_v2 = vadd.f32 %v741_v63, %v735_v62  ;;  %v736_v3 = vmul.f32 %v733_v60, %v724_v0 }
 0x194   :  { %v726_v4 = vpop.f32.mrf.mxu1 }
 0x195   :  { %v744_v5 = vadd.f32 %v741_v63, %v736_v3  ;;  %v745_v7 = vmax.f32 %v743_v2, 0.0 }
 0x196   :  { %v727_v6 = vpop.f32.mrf.mxu1 }
 0x197   :  { %v746_v45 = vmax.f32 %v744_v5, 0.0 }
 0x199   :  { %v838_v9 = vpack.c.bf16 %v746_v45, %v745_v7 }
 0x19b   :  { %756 = vst [vmem:[#allocation7 + $0x8] sm:$0xff] %v838_v9 }
 0x19c   :  { %988 = shalt.err (!%p985_p9)
}
 0x19d   :  { %s1013_s16 = smov 128   ;;  %s1014_s17 = smov 8  }
 0x19e   :  { %768 = dma.vmem_to_hbm [thread:$0]  %s763_s14, 256, %s1238_s5, [#allocation6], %s1013_s16, %s1013_s16, %s1014_s17  }
 0x19f   :  { %999 = dma.done.wait [#allocation6], 256  }
 0x1a0   :  { %1000 = vsyncadd [#allocation6], 4294967040 }
 0x1a1   :  { %772 = vsyncpa [#allocation5], 1 }
 0x1a2   :  { %773 = vsyncpa [#allocation6], 1 }

</bundles_post_ra>
